<compile_context>
chip_gen: v6e
topology: v6e:2x2x1
jax: 0.10.0
libtpu: 0.0.40
codegen_flags: <defaults>
</compile_context>

<pallas_src>
import math
import functools

import jax
import jax.numpy as jnp
from jax.experimental import pallas as pl
from jax.experimental.pallas import tpu as pltpu


# ---------------------------------------------------------------------------
# Pallas kernel: conv stack + ReLU + final conv (scale*lifter pre-folded)
# ---------------------------------------------------------------------------
def _estimator_kernel(x_ref, w1_ref, b1_ref, w2_ref, b2_ref, w3_ref, b3_ref,
                      wf_ref, bf_ref, o_ref, xs_ref, hs_ref, *, T):
    _, L = x_ref.shape                        # L == nb * T (packed lane width)

    # Per-element boundary masks along the packed lane axis (period T).
    lane = jax.lax.broadcasted_iota(jnp.int32, (1, L), 1)
    tpos = lane % T
    not_first = tpos != 0                     # left neighbour is in-element
    not_last = tpos != (T - 1)                # right neighbour is in-element

    def conv3(w_ref_, b_ref_, buf_ref):
        # buf_ref: (C_in, L + 2) scratch; valid data lives in columns [1, L].
        # The edge columns are only ever read behind a mask, so they are never
        # initialized.  The k=3 taps are stacked along the channel (sublane)
        # axis -> one MXU matmul per layer.
        left = jnp.where(not_first, buf_ref[:, 0:L], 0.0)
        center = buf_ref[:, 1:L + 1]
        right = jnp.where(not_last, buf_ref[:, 2:L + 2], 0.0)
        stacked = jnp.concatenate([left, center, right], axis=0)  # (3*C_in, L)
        y = jnp.dot(w_ref_[...], stacked, preferred_element_type=jnp.float32)
        return y + b_ref_[...]                # bias (C_out, 1) broadcasts over L

    xs_ref[:, 1:L + 1] = x_ref[...]                        # one contiguous store
    h = jnp.maximum(conv3(w1_ref, b1_ref, xs_ref), 0.0)    # conv1 + relu
    hs_ref[:, 1:L + 1] = h
    h = jnp.maximum(conv3(w2_ref, b2_ref, hs_ref), 0.0)    # conv2 (grouped) + relu
    hs_ref[:, 1:L + 1] = h
    h = jnp.maximum(conv3(w3_ref, b3_ref, hs_ref), 0.0)    # conv3 (grouped) + relu
    hs_ref[:, 1:L + 1] = h
    o_ref[...] = conv3(wf_ref, bf_ref, hs_ref)   # final conv (scale*mask folded)


def estimator_pallas(feat, packed_params):
    """feat: (B, C_in, T) f32 -> ccep*(scale*mask): (B, out_ch, T) f32."""
    B, C_in, T = feat.shape
    w1s, b1, w2s, b2, w3s, b3, wfs, bfs = packed_params
    channels = w1s.shape[0]
    out_ch = wfs.shape[0]

    # Pack enough batch elements per grid step to make the lane axis dense
    # (>= ~512 lanes) while keeping the block lane width a multiple of 128.
    lane_target = 512
    step = 128 // math.gcd(T, 128)                 # smallest nb with nb*T % 128 == 0
    nb0 = max(1, -(-lane_target // T))
    nb = min(B, step * (-(-nb0 // step)))
    if nb < B and (nb * T) % 128 != 0:
        nb = B                                     # single block: full-dim exception
    Bp = -(-B // nb) * nb
    if Bp != B:
        feat = jnp.pad(feat, ((0, Bp - B), (0, 0), (0, 0)))
    L = nb * T
    # NOTE: scratch/weight residency is well below the scoped-VMEM default on
    # v5e/v6e/v7x at these tile sizes, so no vmem_limit_bytes override.

    # Lane-dense packing (layout plumbing only): (Bp, C_in, T) -> (C_in, Bp*T).
    feat2d = feat.transpose(1, 0, 2).reshape(C_in, Bp * T)

    const_spec = lambda a: pl.BlockSpec(a.shape, lambda i: (0, 0))

    grid_spec = pltpu.PrefetchScalarGridSpec(
        num_scalar_prefetch=0,
        grid=(Bp // nb,),
        in_specs=[
            pl.BlockSpec((C_in, L), lambda i: (0, i)),              # feat slab
            const_spec(w1s), const_spec(b1),                        # conv1
            const_spec(w2s), const_spec(b2),                        # conv2
            const_spec(w3s), const_spec(b3),                        # conv3
            const_spec(wfs), const_spec(bfs),                       # final conv
        ],
        out_specs=pl.BlockSpec((out_ch, L), lambda i: (0, i)),
        scratch_shapes=[
            pltpu.VMEM((C_in, L + 2), jnp.float32),      # padded input slab
            pltpu.VMEM((channels, L + 2), jnp.float32),  # padded hidden slab
        ],
    )

    out = pl.pallas_call(
        functools.partial(_estimator_kernel, T=T),
        out_shape=jax.ShapeDtypeStruct((out_ch, Bp * T), jnp.float32),
        grid_spec=grid_spec,
        compiler_params=pltpu.CompilerParams(
            dimension_semantics=("parallel",)),
    )(feat2d, w1s, b1, w2s, b2, w3s, b3, wfs, bfs)

    # (out_ch, Bp*T) -> (B, out_ch, T): pure layout plumbing in the wrapper.
    return out.reshape(out_ch, Bp, T)[:, :B, :].transpose(1, 0, 2)


# ---------------------------------------------------------------------------
# Plain-JAX glue: cepstrum helpers & FFT-based impulse response
# ---------------------------------------------------------------------------
def complex_cepstrum_scale(ccep_size):
    # TODO(synk): reference impl not provided; standard lifter: c[0]=1, rest x2
    s = jnp.ones((ccep_size,), jnp.float32)
    return s.at[1:].set(2.0)


def complex_cepstrum_lowpass_mask(ccep_size, max_quefrency):
    # TODO(synk): reference impl not provided; keep quefrencies < max_quefrency
    return (jnp.arange(ccep_size) < max_quefrency).astype(jnp.float32)


def complex_cepstrum_to_imp(ccep, fft_size, axis=1):
    # pad cepstrum to fft_size, spectrum = exp(rfft), impulse = irfft
    n = ccep.shape[axis]
    pads = [(0, 0)] * ccep.ndim
    pads[axis] = (0, fft_size - n)
    c = jnp.pad(ccep, pads)
    spec = jnp.exp(jnp.fft.rfft(c, axis=axis))
    return jnp.fft.irfft(spec, n=fft_size, axis=axis)


# ---------------------------------------------------------------------------
# Parameter construction / packing
# ---------------------------------------------------------------------------
def expand_grouped_weight(w, groups):
    """(C_out, C_in/g, K) grouped conv weight -> dense block-diagonal."""
    c_out, c_in_g, k = w.shape
    c_in = c_in_g * groups
    og = c_out // groups
    full = jnp.zeros((c_out, c_in, k), w.dtype)
    for g in range(groups):
        full = full.at[g * og:(g + 1) * og,
                       g * c_in_g:(g + 1) * c_in_g, :].set(
                           w[g * og:(g + 1) * og])
    return full


def stack_taps(w):
    """(C_out, C_in, K) -> (C_out, K*C_in), matching [x(t-1); x(t); x(t+1)]."""
    return jnp.concatenate([w[:, :, k] for k in range(w.shape[2])], axis=1)


def make_params(key, in_channels, channels, out_channels, kernel_size, groups):
    """Deterministic init: weights ~ N(0, 0.01) (init_weights), small biases.
    Grouped convs are already expanded to dense block-diagonal weights."""
    ks = jax.random.split(key, 8)

    def w(k, shape):
        return (0.01 * jax.random.normal(k, shape)).astype(jnp.float32)

    def b(k, c, fan_in):
        bound = 1.0 / math.sqrt(fan_in)
        return jax.random.uniform(k, (c, 1), jnp.float32, -bound, bound)

    w1 = w(ks[0], (channels, in_channels, kernel_size))
    b1 = b(ks[1], channels, in_channels * kernel_size)
    w2 = expand_grouped_weight(
        w(ks[2], (channels, channels // groups, kernel_size)), groups)
    b2 = b(ks[3], channels, (channels // groups) * kernel_size)
    w3 = expand_grouped_weight(
        w(ks[4], (channels, channels // groups, kernel_size)), groups)
    b3 = b(ks[5], channels, (channels // groups) * kernel_size)
    wf = w(ks[6], (out_channels, channels, kernel_size))
    bf = b(ks[7], out_channels, channels * kernel_size)
    return (w1, b1, w2, b2, w3, b3, wf, bf)


def pack_params(params, scale_mask):
    """Stack the k=3 taps into the contraction dim and fold scale*lifter mask
    into the final conv weight/bias (exact: no ReLU after the final layer)."""
    w1, b1, w2, b2, w3, b3, wf, bf = params
    wfs = stack_taps(wf) * scale_mask          # (out_ch, 3*channels)
    bfs = bf * scale_mask                      # (out_ch, 1)
    return (stack_taps(w1), b1, stack_taps(w2), b2, stack_taps(w3), b3,
            wfs, bfs)


@functools.partial(jax.jit, static_argnames=("fft_size",))
def nn_filter_estimator_forward(feat, packed_params, fft_size):
    ccep = estimator_pallas(feat, packed_params)
    return complex_cepstrum_to_imp(ccep, fft_size, axis=1)


# ---------------------------------------------------------------------------
# Pure-JAX reference (for a numerical sanity check of the Pallas kernel)
# ---------------------------------------------------------------------------
def _conv1d_ref(x, w, b):
    # x: (B, C_in, T), w: (C_out, C_in, 3), b: (C_out, 1); padding=1
    T = x.shape[-1]
    xp = jnp.pad(x, ((0, 0), (0, 0), (1, 1)))
    y = sum(jnp.einsum("oc,bct->bot", w[:, :, k], xp[:, :, k:k + T],
                       precision=jax.lax.Precision.HIGHEST)
            for k in range(w.shape[2]))
    return y + b[None, :, :]


def estimator_ref(feat, params, scale_mask):
    w1, b1, w2, b2, w3, b3, wf, bf = params
    h = jax.nn.relu(_conv1d_ref(feat, w1, b1))
    h = jax.nn.relu(_conv1d_ref(h, w2, b2))
    h = jax.nn.relu(_conv1d_ref(h, w3, b3))
    return _conv1d_ref(h, wf, bf) * scale_mask[None]


# ---------------------------------------------------------------------------
if __name__ == "__main__":
    # small shapes consistent with the module's constructor args
    B, T = 2, 16
    in_channels, channels, out_channels = 16, 32, 24
    kernel_size, padding, groups = 3, 1, 8
    ccep_size = out_channels
    fft_size = 64
    max_quefrency = 8

    key = jax.random.PRNGKey(0)
    k_feat, k_par = jax.random.split(key)

    feat = jax.random.normal(k_feat, (B, in_channels, T), jnp.float32)
    params = make_params(k_par, in_channels, channels, out_channels,
                         kernel_size, groups)

    scale = complex_cepstrum_scale(ccep_size)[:, None]              # (ccep, 1)
    mask = complex_cepstrum_lowpass_mask(ccep_size, max_quefrency)[:, None]
    scale_mask = scale * mask
    packed = pack_params(params, scale_mask)

    # Numerical sanity check of the Pallas conv stack vs a pure-JAX reference.
    ccep_ker = jax.block_until_ready(estimator_pallas(feat, packed))
    ccep_ref = estimator_ref(feat, params, scale_mask)
    err = float(jnp.max(jnp.abs(ccep_ker - ccep_ref)))
    tol = 1e-3 + 1e-2 * float(jnp.max(jnp.abs(ccep_ref)))
    assert ccep_ker.shape == (B, out_channels, T), ccep_ker.shape
    assert err <= tol, f"kernel mismatch: max abs err {err} > tol {tol}"

    out = nn_filter_estimator_forward(feat, packed, fft_size)
    out = jax.block_until_ready(out)
    assert out.shape == (B, fft_size, T), out.shape
    assert bool(jnp.all(jnp.isfinite(out)))
    print("KERNEL_OK")
</pallas_src>

<mosaic_0001>
module attributes {stable_mosaic.version = 11 : i64} {
  func.func @_estimator_kernel(%arg0: i32, %arg1: memref<16x32xf32, #tpu.memory_space<vmem>>, %arg2: memref<32x48xf32, #tpu.memory_space<vmem>>, %arg3: memref<32x1xf32, #tpu.memory_space<vmem>>, %arg4: memref<32x96xf32, #tpu.memory_space<vmem>>, %arg5: memref<32x1xf32, #tpu.memory_space<vmem>>, %arg6: memref<32x96xf32, #tpu.memory_space<vmem>>, %arg7: memref<32x1xf32, #tpu.memory_space<vmem>>, %arg8: memref<24x96xf32, #tpu.memory_space<vmem>>, %arg9: memref<24x1xf32, #tpu.memory_space<vmem>>, %arg10: memref<24x32xf32, #tpu.memory_space<vmem>>, %arg11: memref<16x34xf32, #tpu.memory_space<vmem>>, %arg12: memref<32x34xf32, #tpu.memory_space<vmem>>) attributes {dimension_semantics = [#tpu.dimension_semantics<parallel>], iteration_bounds = array<i64: 1>, scalar_prefetch = 0 : i64, scratch_operands = 2 : i64, tpu.core_type = #tpu.core_type<tc>, window_params = [{transform_indices = @transform_0, window_bounds = array<i64: 16, 32>}, {pipeline_mode = #tpu.pipeline_mode<synchronous>, transform_indices = @transform_1, window_bounds = array<i64: 32, 48>}, {pipeline_mode = #tpu.pipeline_mode<synchronous>, transform_indices = @transform_2, window_bounds = array<i64: 32, 1>}, {pipeline_mode = #tpu.pipeline_mode<synchronous>, transform_indices = @transform_3, window_bounds = array<i64: 32, 96>}, {pipeline_mode = #tpu.pipeline_mode<synchronous>, transform_indices = @transform_4, window_bounds = array<i64: 32, 1>}, {pipeline_mode = #tpu.pipeline_mode<synchronous>, transform_indices = @transform_5, window_bounds = array<i64: 32, 96>}, {pipeline_mode = #tpu.pipeline_mode<synchronous>, transform_indices = @transform_6, window_bounds = array<i64: 32, 1>}, {pipeline_mode = #tpu.pipeline_mode<synchronous>, transform_indices = @transform_7, window_bounds = array<i64: 24, 96>}, {pipeline_mode = #tpu.pipeline_mode<synchronous>, transform_indices = @transform_8, window_bounds = array<i64: 24, 1>}, {transform_indices = @transform_9, window_bounds = array<i64: 24, 32>}]} {
    %0 = tpu.iota {dimensions = array<i32: 1>} : vector<1x32xi32>
    %c16_i32 = arith.constant 16 : i32
    %c0_i32 = arith.constant 0 : i32
    %1 = arith.cmpi eq, %c16_i32, %c0_i32 : i32
    %c1_i32 = arith.constant 1 : i32
    %2 = arith.select %1, %c1_i32, %c16_i32 : i32
    %3 = vector.broadcast %2 : i32 to vector<1x32xi32>
    %4 = arith.remsi %0, %3 : vector<1x32xi32>
    %c0_i32_0 = arith.constant 0 : i32
    %5 = vector.broadcast %c0_i32_0 : i32 to vector<1x32xi32>
    %6 = arith.cmpi ne, %4, %5 : vector<1x32xi32>
    %c0_i32_1 = arith.constant 0 : i32
    %7 = vector.broadcast %c0_i32_1 : i32 to vector<1x32xi32>
    %8 = arith.cmpi slt, %4, %7 : vector<1x32xi32>
    %c0_i32_2 = arith.constant 0 : i32
    %9 = arith.cmpi slt, %2, %c0_i32_2 : i32
    %10 = vector.broadcast %9 : i1 to vector<1x32xi1>
    %11 = vector.broadcast %10 : vector<1x32xi1> to vector<1x32xi1>
    %12 = arith.xori %8, %11 : vector<1x32xi1>
    %13 = arith.andi %12, %6 : vector<1x32xi1>
    %14 = vector.broadcast %2 : i32 to vector<1x32xi32>
    %15 = arith.addi %4, %14 : vector<1x32xi32>
    %16 = arith.select %13, %15, %4 : vector<1x32xi1>, vector<1x32xi32>
    %c0_i32_3 = arith.constant 0 : i32
    %17 = vector.broadcast %c0_i32_3 : i32 to vector<1x32xi32>
    %18 = arith.cmpi ne, %16, %17 : vector<1x32xi32>
    %c15_i32 = arith.constant 15 : i32
    %19 = vector.broadcast %c15_i32 : i32 to vector<1x32xi32>
    %20 = arith.cmpi ne, %16, %19 : vector<1x32xi32>
    %c0 = arith.constant 0 : index
    %c0_4 = arith.constant 0 : index
    %21 = vector.load %arg1[%c0, %c0_4] : memref<16x32xf32, #tpu.memory_space<vmem>>, vector<16x32xf32>
    %c0_5 = arith.constant 0 : index
    %c1 = arith.constant 1 : index
    %22 = vector.load %arg11[%c0_5, %c1] : memref<16x34xf32, #tpu.memory_space<vmem>>, vector<16x32xf32>
    tpu.vector_store %arg11[%c0_5, %c1], %21 {strides = array<i32>} : memref<16x34xf32, #tpu.memory_space<vmem>>, vector<16x32xf32>,
    %c0_6 = arith.constant 0 : index
    %c0_7 = arith.constant 0 : index
    %23 = vector.load %arg11[%c0_6, %c0_7] : memref<16x34xf32, #tpu.memory_space<vmem>>, vector<16x32xf32>
    %cst = arith.constant 0.000000e+00 : f32
    %24 = vector.shape_cast %18 : vector<1x32xi1> to vector<1x32xi1>
    %25 = vector.broadcast %24 : vector<1x32xi1> to vector<16x32xi1>
    %26 = vector.broadcast %cst : f32 to vector<16x32xf32>
    %27 = arith.select %25, %23, %26 : vector<16x32xi1>, vector<16x32xf32>
    %c0_8 = arith.constant 0 : index
    %c1_9 = arith.constant 1 : index
    %28 = vector.load %arg11[%c0_8, %c1_9] : memref<16x34xf32, #tpu.memory_space<vmem>>, vector<16x32xf32>
    %c0_10 = arith.constant 0 : index
    %c2 = arith.constant 2 : index
    %29 = vector.load %arg11[%c0_10, %c2] : memref<16x34xf32, #tpu.memory_space<vmem>>, vector<16x32xf32>
    %cst_11 = arith.constant 0.000000e+00 : f32
    %30 = vector.shape_cast %20 : vector<1x32xi1> to vector<1x32xi1>
    %31 = vector.broadcast %30 : vector<1x32xi1> to vector<16x32xi1>
    %32 = vector.broadcast %cst_11 : f32 to vector<16x32xf32>
    %33 = arith.select %31, %29, %32 : vector<16x32xi1>, vector<16x32xf32>
    %34 = tpu.concatenate %27, %28, %33 in 0 : vector<16x32xf32>, vector<16x32xf32>, vector<16x32xf32> -> vector<48x32xf32>
    %c0_12 = arith.constant 0 : index
    %c0_13 = arith.constant 0 : index
    %35 = vector.load %arg2[%c0_12, %c0_13] : memref<32x48xf32, #tpu.memory_space<vmem>>, vector<32x48xf32>
    %cst_14 = arith.constant dense<0.000000e+00> : vector<32x32xf32>
    %36 = tpu.matmul %35, %34, %cst_14 {dimension_numbers = #tpu.dot_dimension_numbers<[1], [0], [0], [1], [0, 0, 1, 1], [], []>} : vector<32x48xf32>, vector<48x32xf32>, vector<32x32xf32> -> vector<32x32xf32>
    %c0_15 = arith.constant 0 : index
    %c0_16 = arith.constant 0 : index
    %37 = vector.load %arg3[%c0_15, %c0_16] : memref<32x1xf32, #tpu.memory_space<vmem>>, vector<32x1xf32>
    %38 = vector.broadcast %37 : vector<32x1xf32> to vector<32x32xf32>
    %39 = arith.addf %36, %38 : vector<32x32xf32>
    %cst_17 = arith.constant 0.000000e+00 : f32
    %40 = vector.broadcast %cst_17 : f32 to vector<32x32xf32>
    %41 = arith.maximumf %39, %40 : vector<32x32xf32>
    %c0_18 = arith.constant 0 : index
    %c1_19 = arith.constant 1 : index
    %42 = vector.load %arg12[%c0_18, %c1_19] : memref<32x34xf32, #tpu.memory_space<vmem>>, vector<32x32xf32>
    tpu.vector_store %arg12[%c0_18, %c1_19], %41 {strides = array<i32>} : memref<32x34xf32, #tpu.memory_space<vmem>>, vector<32x32xf32>,
    %c0_20 = arith.constant 0 : index
    %c0_21 = arith.constant 0 : index
    %43 = vector.load %arg12[%c0_20, %c0_21] : memref<32x34xf32, #tpu.memory_space<vmem>>, vector<32x32xf32>
    %cst_22 = arith.constant 0.000000e+00 : f32
    %44 = vector.shape_cast %18 : vector<1x32xi1> to vector<1x32xi1>
    %45 = vector.broadcast %44 : vector<1x32xi1> to vector<32x32xi1>
    %46 = vector.broadcast %cst_22 : f32 to vector<32x32xf32>
    %47 = arith.select %45, %43, %46 : vector<32x32xi1>, vector<32x32xf32>
    %c0_23 = arith.constant 0 : index
    %c1_24 = arith.constant 1 : index
    %48 = vector.load %arg12[%c0_23, %c1_24] : memref<32x34xf32, #tpu.memory_space<vmem>>, vector<32x32xf32>
    %c0_25 = arith.constant 0 : index
    %c2_26 = arith.constant 2 : index
    %49 = vector.load %arg12[%c0_25, %c2_26] : memref<32x34xf32, #tpu.memory_space<vmem>>, vector<32x32xf32>
    %cst_27 = arith.constant 0.000000e+00 : f32
    %50 = vector.shape_cast %20 : vector<1x32xi1> to vector<1x32xi1>
    %51 = vector.broadcast %50 : vector<1x32xi1> to vector<32x32xi1>
    %52 = vector.broadcast %cst_27 : f32 to vector<32x32xf32>
    %53 = arith.select %51, %49, %52 : vector<32x32xi1>, vector<32x32xf32>
    %54 = tpu.concatenate %47, %48, %53 in 0 : vector<32x32xf32>, vector<32x32xf32>, vector<32x32xf32> -> vector<96x32xf32>
    %c0_28 = arith.constant 0 : index
    %c0_29 = arith.constant 0 : index
    %55 = vector.load %arg4[%c0_28, %c0_29] : memref<32x96xf32, #tpu.memory_space<vmem>>, vector<32x96xf32>
    %cst_30 = arith.constant dense<0.000000e+00> : vector<32x32xf32>
    %56 = tpu.matmul %55, %54, %cst_30 {dimension_numbers = #tpu.dot_dimension_numbers<[1], [0], [0], [1], [0, 0, 1, 1], [], []>} : vector<32x96xf32>, vector<96x32xf32>, vector<32x32xf32> -> vector<32x32xf32>
    %c0_31 = arith.constant 0 : index
    %c0_32 = arith.constant 0 : index
    %57 = vector.load %arg5[%c0_31, %c0_32] : memref<32x1xf32, #tpu.memory_space<vmem>>, vector<32x1xf32>
    %58 = vector.broadcast %57 : vector<32x1xf32> to vector<32x32xf32>
    %59 = arith.addf %56, %58 : vector<32x32xf32>
    %cst_33 = arith.constant 0.000000e+00 : f32
    %60 = vector.broadcast %cst_33 : f32 to vector<32x32xf32>
    %61 = arith.maximumf %59, %60 : vector<32x32xf32>
    %c0_34 = arith.constant 0 : index
    %c1_35 = arith.constant 1 : index
    %62 = vector.load %arg12[%c0_34, %c1_35] : memref<32x34xf32, #tpu.memory_space<vmem>>, vector<32x32xf32>
    tpu.vector_store %arg12[%c0_34, %c1_35], %61 {strides = array<i32>} : memref<32x34xf32, #tpu.memory_space<vmem>>, vector<32x32xf32>,
    %c0_36 = arith.constant 0 : index
    %c0_37 = arith.constant 0 : index
    %63 = vector.load %arg12[%c0_36, %c0_37] : memref<32x34xf32, #tpu.memory_space<vmem>>, vector<32x32xf32>
    %cst_38 = arith.constant 0.000000e+00 : f32
    %64 = vector.shape_cast %18 : vector<1x32xi1> to vector<1x32xi1>
    %65 = vector.broadcast %64 : vector<1x32xi1> to vector<32x32xi1>
    %66 = vector.broadcast %cst_38 : f32 to vector<32x32xf32>
    %67 = arith.select %65, %63, %66 : vector<32x32xi1>, vector<32x32xf32>
    %c0_39 = arith.constant 0 : index
    %c1_40 = arith.constant 1 : index
    %68 = vector.load %arg12[%c0_39, %c1_40] : memref<32x34xf32, #tpu.memory_space<vmem>>, vector<32x32xf32>
    %c0_41 = arith.constant 0 : index
    %c2_42 = arith.constant 2 : index
    %69 = vector.load %arg12[%c0_41, %c2_42] : memref<32x34xf32, #tpu.memory_space<vmem>>, vector<32x32xf32>
    %cst_43 = arith.constant 0.000000e+00 : f32
    %70 = vector.shape_cast %20 : vector<1x32xi1> to vector<1x32xi1>
    %71 = vector.broadcast %70 : vector<1x32xi1> to vector<32x32xi1>
    %72 = vector.broadcast %cst_43 : f32 to vector<32x32xf32>
    %73 = arith.select %71, %69, %72 : vector<32x32xi1>, vector<32x32xf32>
    %74 = tpu.concatenate %67, %68, %73 in 0 : vector<32x32xf32>, vector<32x32xf32>, vector<32x32xf32> -> vector<96x32xf32>
    %c0_44 = arith.constant 0 : index
    %c0_45 = arith.constant 0 : index
    %75 = vector.load %arg6[%c0_44, %c0_45] : memref<32x96xf32, #tpu.memory_space<vmem>>, vector<32x96xf32>
    %cst_46 = arith.constant dense<0.000000e+00> : vector<32x32xf32>
    %76 = tpu.matmul %75, %74, %cst_46 {dimension_numbers = #tpu.dot_dimension_numbers<[1], [0], [0], [1], [0, 0, 1, 1], [], []>} : vector<32x96xf32>, vector<96x32xf32>, vector<32x32xf32> -> vector<32x32xf32>
    %c0_47 = arith.constant 0 : index
    %c0_48 = arith.constant 0 : index
    %77 = vector.load %arg7[%c0_47, %c0_48] : memref<32x1xf32, #tpu.memory_space<vmem>>, vector<32x1xf32>
    %78 = vector.broadcast %77 : vector<32x1xf32> to vector<32x32xf32>
    %79 = arith.addf %76, %78 : vector<32x32xf32>
    %cst_49 = arith.constant 0.000000e+00 : f32
    %80 = vector.broadcast %cst_49 : f32 to vector<32x32xf32>
    %81 = arith.maximumf %79, %80 : vector<32x32xf32>
    %c0_50 = arith.constant 0 : index
    %c1_51 = arith.constant 1 : index
    %82 = vector.load %arg12[%c0_50, %c1_51] : memref<32x34xf32, #tpu.memory_space<vmem>>, vector<32x32xf32>
    tpu.vector_store %arg12[%c0_50, %c1_51], %81 {strides = array<i32>} : memref<32x34xf32, #tpu.memory_space<vmem>>, vector<32x32xf32>,
    %c0_52 = arith.constant 0 : index
    %c0_53 = arith.constant 0 : index
    %83 = vector.load %arg12[%c0_52, %c0_53] : memref<32x34xf32, #tpu.memory_space<vmem>>, vector<32x32xf32>
    %cst_54 = arith.constant 0.000000e+00 : f32
    %84 = vector.shape_cast %18 : vector<1x32xi1> to vector<1x32xi1>
    %85 = vector.broadcast %84 : vector<1x32xi1> to vector<32x32xi1>
    %86 = vector.broadcast %cst_54 : f32 to vector<32x32xf32>
    %87 = arith.select %85, %83, %86 : vector<32x32xi1>, vector<32x32xf32>
    %c0_55 = arith.constant 0 : index
    %c1_56 = arith.constant 1 : index
    %88 = vector.load %arg12[%c0_55, %c1_56] : memref<32x34xf32, #tpu.memory_space<vmem>>, vector<32x32xf32>
    %c0_57 = arith.constant 0 : index
    %c2_58 = arith.constant 2 : index
    %89 = vector.load %arg12[%c0_57, %c2_58] : memref<32x34xf32, #tpu.memory_space<vmem>>, vector<32x32xf32>
    %cst_59 = arith.constant 0.000000e+00 : f32
    %90 = vector.shape_cast %20 : vector<1x32xi1> to vector<1x32xi1>
    %91 = vector.broadcast %90 : vector<1x32xi1> to vector<32x32xi1>
    %92 = vector.broadcast %cst_59 : f32 to vector<32x32xf32>
    %93 = arith.select %91, %89, %92 : vector<32x32xi1>, vector<32x32xf32>
    %94 = tpu.concatenate %87, %88, %93 in 0 : vector<32x32xf32>, vector<32x32xf32>, vector<32x32xf32> -> vector<96x32xf32>
    %c0_60 = arith.constant 0 : index
    %c0_61 = arith.constant 0 : index
    %95 = vector.load %arg8[%c0_60, %c0_61] : memref<24x96xf32, #tpu.memory_space<vmem>>, vector<24x96xf32>
    %cst_62 = arith.constant dense<0.000000e+00> : vector<24x32xf32>
    %96 = tpu.matmul %95, %94, %cst_62 {dimension_numbers = #tpu.dot_dimension_numbers<[1], [0], [0], [1], [0, 0, 1, 1], [], []>} : vector<24x96xf32>, vector<96x32xf32>, vector<24x32xf32> -> vector<24x32xf32>
    %c0_63 = arith.constant 0 : index
    %c0_64 = arith.constant 0 : index
    %97 = vector.load %arg9[%c0_63, %c0_64] : memref<24x1xf32, #tpu.memory_space<vmem>>, vector<24x1xf32>
    %98 = vector.broadcast %97 : vector<24x1xf32> to vector<24x32xf32>
    %99 = arith.addf %96, %98 : vector<24x32xf32>
    %c0_65 = arith.constant 0 : index
    %c0_66 = arith.constant 0 : index
    %100 = vector.load %arg10[%c0_65, %c0_66] : memref<24x32xf32, #tpu.memory_space<vmem>>, vector<24x32xf32>
    tpu.vector_store %arg10[%c0_65, %c0_66], %99 {strides = array<i32>} : memref<24x32xf32, #tpu.memory_space<vmem>>, vector<24x32xf32>,
    return
  }
  func.func @transform_0(%arg0: i32) -> (i32, i32) {
    %c0_i32 = arith.constant 0 : i32
    %c0_i32_0 = arith.constant 0 : i32
    return %c0_i32, %arg0 : i32, i32
  }
  func.func @transform_1(%arg0: i32) -> (i32, i32) {
    %c0_i32 = arith.constant 0 : i32
    %c0_i32_0 = arith.constant 0 : i32
    %c0_i32_1 = arith.constant 0 : i32
    return %c0_i32, %c0_i32_0 : i32, i32
  }
  func.func @transform_2(%arg0: i32) -> (i32, i32) {
    %c0_i32 = arith.constant 0 : i32
    %c0_i32_0 = arith.constant 0 : i32
    %c0_i32_1 = arith.constant 0 : i32
    return %c0_i32, %c0_i32_0 : i32, i32
  }
  func.func @transform_3(%arg0: i32) -> (i32, i32) {
    %c0_i32 = arith.constant 0 : i32
    %c0_i32_0 = arith.constant 0 : i32
    %c0_i32_1 = arith.constant 0 : i32
    return %c0_i32, %c0_i32_0 : i32, i32
  }
  func.func @transform_4(%arg0: i32) -> (i32, i32) {
    %c0_i32 = arith.constant 0 : i32
    %c0_i32_0 = arith.constant 0 : i32
    %c0_i32_1 = arith.constant 0 : i32
    return %c0_i32, %c0_i32_0 : i32, i32
  }
  func.func @transform_5(%arg0: i32) -> (i32, i32) {
    %c0_i32 = arith.constant 0 : i32
    %c0_i32_0 = arith.constant 0 : i32
    %c0_i32_1 = arith.constant 0 : i32
    return %c0_i32, %c0_i32_0 : i32, i32
  }
  func.func @transform_6(%arg0: i32) -> (i32, i32) {
    %c0_i32 = arith.constant 0 : i32
    %c0_i32_0 = arith.constant 0 : i32
    %c0_i32_1 = arith.constant 0 : i32
    return %c0_i32, %c0_i32_0 : i32, i32
  }
  func.func @transform_7(%arg0: i32) -> (i32, i32) {
    %c0_i32 = arith.constant 0 : i32
    %c0_i32_0 = arith.constant 0 : i32
    %c0_i32_1 = arith.constant 0 : i32
    return %c0_i32, %c0_i32_0 : i32, i32
  }
  func.func @transform_8(%arg0: i32) -> (i32, i32) {
    %c0_i32 = arith.constant 0 : i32
    %c0_i32_0 = arith.constant 0 : i32
    %c0_i32_1 = arith.constant 0 : i32
    return %c0_i32, %c0_i32_0 : i32, i32
  }
  func.func @transform_9(%arg0: i32) -> (i32, i32) {
    %c0_i32 = arith.constant 0 : i32
    %c0_i32_0 = arith.constant 0 : i32
    return %c0_i32, %arg0 : i32, i32
  }
}

</mosaic_0001>

<bundles_post_ra>
// kernel: tpu_custom_call.1
= control target key start
LH: loop header
LB: loop body
LE: loop exit
PB: predicated region body
PF: predicated region fallthrough
CT: control target
= control target key end

     0   :  { %14 = vsyncpa [#allocation5], 0  ;;  %s1425_s0 = inlined_call_operand.hbm [shape: f32[16,32], index: 0, kind: input, shape index: {}]   ;;  %s1426_s1 = inlined_call_operand.vmem [shape: f32[32,48], index: 1, kind: input, shape index: {}]   ;;  %s1427_s2 = inlined_call_operand.vmem [shape: f32[32,1], index: 2, kind: input, shape index: {}]   ;;  %s1428_s3 = inlined_call_operand.vmem [shape: f32[32,96], index: 3, kind: input, shape index: {}]   ;;  %s1429_s4 = inlined_call_operand.vmem [shape: f32[32,1], index: 4, kind: input, shape index: {}]   ;;  %s1430_s5 = inlined_call_operand.vmem [shape: f32[32,96], index: 5, kind: input, shape index: {}]   ;;  %s1431_s6 = inlined_call_operand.vmem [shape: f32[32,1], index: 6, kind: input, shape index: {}]   ;;  %s1432_s7 = inlined_call_operand.vmem [shape: f32[24,96], index: 7, kind: input, shape index: {}]   ;;  %s1433_s8 = inlined_call_operand.vmem [shape: f32[24,1], index: 8, kind: input, shape index: {}]   ;;  %s1434_s9 = inlined_call_operand.hbm [shape: f32[24,32], index: 9, kind: output, shape index: {}]  }
   0x1   :  { %15 = vsyncpa [#allocation6], 0  ;;  %s1067_s30 = smov [#allocation4]  }
   0x2   :  { %s21_s10 = sshll.u32 %s1067_s30, 4  ;;  %s22_s10 = int_to_ptr.vmem [resolvable:$true] %s21_s10 }
   0x3   :  { %s1031_s11 = scalar_lea.vmem %s22_s10, 256  ;;  %p1036_p1 = scmp.lt.s32.totalorder %s22_s10, %s22_s10 }
   0x4   :  { %p1032_p0 = scmp.ne.s32.totalorder %s22_s10, %s1031_s11  ;;  %p1037_p2 = scmp.lt.s32.totalorder %s1031_s11, %s1031_s11 }
   0x6   :  { %p1038_p3 = por %p1037_p2, %p1036_p1 }
   0x8   :  { %p1039_p4 = pnand %p1038_p3, %p1032_p0 }
   0xa   :  { %1042 = shalt.err (!%p1039_p4)
}
   0xb   :  { %s1068_s12 = smov 128   ;;  %s1069_s13 = smov 8  }
   0xc   :  { %27 = dma.hbm_to_vmem [thread:$0]  %s1425_s0, 256, %s22_s10, [#allocation5], %s1068_s12, %s1068_s12, %s1069_s13  }
   0xd   :  { %1063 = dma.done.wait [#allocation5], 256  }
   0xe   :  { %1064 = vsyncadd [#allocation5], 4294967040  ;;  %v64_v0 = vld [vmem:[#allocation4 + $0x8] sm:$0xff]  ;;  %s1070_s16 = smov 1   ;;  %v63_v1 = vld [vmem:[#allocation4] sm:$0xff]  ;;  %vm73_vm0 = vcmask 269320   ;;  %v47_v12 = vlaneseq }
   0xf   :  { %69 = vrot.lane.b32.xlu0 %v64_v0, %s1070_s16  ;;  %v100_v5 = vld [vmem:[%s1426_s1] sm:$0xff]  ;;  %vm128_vm1 = vcmask 392192   ;;  %s1071_s0 = smov 126   ;;  %s1072_s19 = smov 127   ;;  %v107_v7 = vld [vmem:[%s1427_s2 + $0x18] sm:$0xff]  ;;  %v1073_v8 = vmov 0  }
  0x10   :  { %912 = vmatprep.mubr.msk.f32.mxu0 %vm128_vm1, %v100_v5  ;;  %1022 = vset.pattern.permute.xlu1 %v1073_v8  ;;  %v104_v9 = vld [vmem:[%s1427_s2] sm:$0xff]  ;;  %v106_v10 = vld [vmem:[%s1427_s2 + $0x10] sm:$0xff]  ;;  %v105_v11 = vld [vmem:[%s1427_s2 + $0x8] sm:$0xff]  ;;  %v48_v13 = vand.u32 127, %v47_v12  ;;  %vm318_vm4 = vcmask 785408   ;;  %vm1075_vm5 = vmmov 0  }
  0x11   :  { %1021 = vset.pattern.permute.xlu0 %v1073_v8  ;;  %v101_v21 = vld [vmem:[%s1426_s1 + $0x8] sm:$0xff]  ;;  %v102_v22 = vld [vmem:[%s1426_s1 + $0x10] sm:$0xff]  ;;  %v103_v23 = vld [vmem:[%s1426_s1 + $0x18] sm:$0xff]  ;;  %vm779_vm6 = vcmask 261120   ;;  %s1076_s29 = smov [#allocation7]  }
  0x12   :  { %v53_v14 = vand.u32 15, %v48_v13  ;;  %v290_v48 = vld [vmem:[%s1428_s3] sm:$0xff]  ;;  %v297_v49 = vld [vmem:[%s1429_s4 + $0x18] sm:$0xff]  ;;  %v296_v50 = vld [vmem:[%s1429_s4 + $0x10] sm:$0xff]  ;;  %s788_s30 = sshll.u32 %s1076_s29, 4  ;;  %s789_s30 = int_to_ptr.vmem [resolvable:$true] %s788_s30 }
  0x13   :  { %67 = vrot.lane.b32.xlu0 %v63_v1, %s1070_s16  ;;  %942 = vmatprep.mubr.msk.f32.mxu1 %vm318_vm4, %v290_v48  ;;  %v295_v51 = vld [vmem:[%s1429_s4 + $0x8] sm:$0xff]  ;;  %v294_v52 = vld [vmem:[%s1429_s4] sm:$0xff]  ;;  %v292_v62 = vld [vmem:[%s1428_s3 + $0x10] sm:$0xff]  ;;  %p1048_p6 = scmp.lt.s32.totalorder %s789_s30, %s789_s30 }
  0x14   :  { %vm1157_vm2 = vcmp.ne.s32.totalorder %v53_v14, 15  ;;  %vm1169_vm3 = vcmp.ne.s32.totalorder %v53_v14, 0  ;;  %v291_v61 = vld [vmem:[%s1428_s3 + $0x8] sm:$0xff]  ;;  %v293_v63 = vld [vmem:[%s1428_s3 + $0x18] sm:$0xff]  ;;  %v669_v15 = vld [vmem:[%s1432_s7] sm:$0xff] }
  0x81   :  { %v70_v2 = vpop.permute.xlu0 %69 }
  0x82   :  { %75 = vst.msk [vmem:[#allocation2 + $0x8] sm:$0xff] %vm73_vm0, %v70_v2 }
  0x85   :  { %v68_v3 = vpop.permute.xlu0 %67 }
  0x86   :  { %74 = vst.msk [vmem:[#allocation2] sm:$0xff] %vm73_vm0, %v68_v3 }
  0x89   :  { %v77_v4 = vld [vmem:[#allocation2 + $0x8] sm:$0xff] }
  0x8a   :  { %88 = vrot.lane.b32.xlu1 %v77_v4, %s1071_s0  ;;  %96 = vrot.lane.b32.xlu0 %v77_v4, %s1072_s19 }
  0x8d   :  { %v76_v6 = vld [vmem:[#allocation2] sm:$0xff] }
  0x8e   :  { %86 = vrot.lane.b32.xlu1 %v76_v6, %s1071_s0  ;;  %125 = vperm.xlu0 %1021, %v107_v7  }
  0x92   :  { %94 = vrot.lane.b32.xlu1 %v76_v6, %s1072_s19  ;;  %110 = vperm.xlu0 %1021, %v104_v9  }
  0x96   :  { %120 = vperm.xlu1 %1022, %v106_v10  }
  0x9a   :  { %115 = vperm.xlu1 %1022, %v105_v11  }
  0xfc   :  { %v89_v16 = vpop.permute.xlu1 %88  ;;  %v97_v18 = vpop.permute.xlu0 %96 }
  0xfd   :  { %900 = vmatprep.subr.msk.mxu0 %vm1157_vm2, %v89_v16 }
  0xfe   :  { %901 = vmatpush3.msk.msra.mxu0 %vm1157_vm2, %v89_v16 }
 0x100   :  { %v87_v17 = vpop.permute.xlu1 %86 }
 0x101   :  { %902 = vmatprep.subr.msk.mxu0 %vm1157_vm2, %v87_v17 }
 0x102   :  { %903 = vmatpush3.msk.msra.mxu0 %vm1157_vm2, %v87_v17 }
 0x103   :  { %904 = vmatprep.subr.mxu0 %v97_v18 }
 0x104   :  { %v95_v19 = vpop.permute.xlu1 %94  ;;  %905 = vmatpush3.msra.mxu0 %v97_v18 }
 0x105   :  { %906 = vmatprep.subr.mxu0 %v95_v19 }
 0x106   :  { %907 = vmatpush3.msra.mxu0 %v95_v19 }
 0x107   :  { %908 = vmatprep.subr.msk.mxu0 %vm1169_vm3, %v77_v4 }
 0x108   :  { %909 = vmatpush3.msk.msra.mxu0 %vm1169_vm3, %v77_v4 }
 0x109   :  { %910 = vmatprep.subr.msk.mxu0 %vm1169_vm3, %v76_v6  ;;  %v126_v25 = vpop.permute.xlu0 %125 }
 0x10a   :  { %911 = vmatpush3.msk.msra.mxu0 %vm1169_vm3, %v76_v6 }
 0x10b   :  { %913 = vmatmul.mubr.msk.f32.vlgmr.msra.gmra.mxu0 %vm128_vm1, %v101_v21 }
 0x10c   :  { %915 = vmatprep.mubr.msk.f32.mxu0 %vm128_vm1, %v102_v22 }
 0x10d   :  { %v111_v31 = vpop.permute.xlu0 %110 }
 0x10f   :  { %916 = vmatmul.mubr.msk.f32.gmra.mxu0 %vm128_vm1, %v103_v23 }
 0x111   :  { %v121_v24 = vpop.permute.xlu1 %120 }
 0x115   :  { %v116_v28 = vpop.permute.xlu1 %115 }
 0x1cb   :  { %v914_v26 = vpop.f32.mrf.mxu0 }
 0x1cc   :  { %v213_v33 = vadd.f32 %v914_v26, %v116_v28  ;;  %v480_v26 = vld [vmem:[%s1430_s5] sm:$0xff]  ;;  %v486_v28 = vld [vmem:[%s1431_s6 + $0x10] sm:$0xff] }
 0x1cd   :  { %v207_v27 = vpop.f32.mrf.mxu0  ;;  %972 = vmatprep.mubr.msk.f32.mxu0 %vm318_vm4, %v480_v26 }
 0x1ce   :  { %v208_v36 = vadd.f32 %v207_v27, %v111_v31  ;;  %v227_v38 = vmax.f32 %v213_v33, 0.0  ;;  %v487_v27 = vld [vmem:[%s1431_s6 + $0x18] sm:$0xff] }
 0x1cf   :  { %v917_v29 = vpop.f32.mrf.mxu0 }
 0x1d0   :  { %v223_v30 = vadd.f32 %v917_v29, %v126_v25  ;;  %v226_v39 = vmax.f32 %v208_v36, 0.0  ;;  %v485_v29 = vld [vmem:[%s1431_s6 + $0x8] sm:$0xff] }
 0x1d1   :  { %v217_v32 = vpop.f32.mrf.mxu0 }
 0x1d2   :  { %v229_v34 = vmax.f32 %v223_v30, 0.0  ;;  %v218_v35 = vadd.f32 %v217_v32, %v121_v24  ;;  %v484_v30 = vld [vmem:[%s1431_s6] sm:$0xff] }
 0x1d4   :  { %v228_v37 = vmax.f32 %v218_v35, 0.0  ;;  %240 = vrot.lane.b32.xlu1 %v229_v34, %s1070_s16 }
 0x1d6   :  { %238 = vrot.lane.b32.xlu0 %v228_v37, %s1070_s16 }
 0x1d8   :  { %236 = vrot.lane.b32.xlu1 %v227_v38, %s1070_s16 }
 0x1da   :  { %234 = vrot.lane.b32.xlu0 %v226_v39, %s1070_s16  ;;  %v481_v39 = vld [vmem:[%s1430_s5 + $0x8] sm:$0xff] }
 0x246   :  { %v241_v40 = vpop.permute.xlu1 %240 }
 0x247   :  { %249 = vst.msk [vmem:[#allocation3 + $0x18] sm:$0xff] %vm73_vm0, %v241_v40  ;;  %v482_v40 = vld [vmem:[%s1430_s5 + $0x10] sm:$0xff] }
 0x248   :  { %v239_v41 = vpop.permute.xlu0 %238 }
 0x249   :  { %248 = vst.msk [vmem:[#allocation3 + $0x10] sm:$0xff] %vm73_vm0, %v239_v41  ;;  %v483_v41 = vld [vmem:[%s1430_s5 + $0x18] sm:$0xff] }
 0x24a   :  { %v237_v42 = vpop.permute.xlu1 %236 }
 0x24b   :  { %247 = vst.msk [vmem:[#allocation3 + $0x8] sm:$0xff] %vm73_vm0, %v237_v42 }
 0x24c   :  { %v235_v43 = vpop.permute.xlu0 %234 }
 0x24d   :  { %246 = vst.msk [vmem:[#allocation3] sm:$0xff] %vm73_vm0, %v235_v43 }
 0x24e   :  { %v253_v44 = vld [vmem:[#allocation3 + $0x18] sm:$0xff] }
 0x24f   :  { %268 = vrot.lane.b32.xlu1 %v253_v44, %s1071_s0 }
 0x250   :  { %v252_v45 = vld [vmem:[#allocation3 + $0x10] sm:$0xff] }
 0x251   :  { %266 = vrot.lane.b32.xlu0 %v252_v45, %s1071_s0 }
 0x252   :  { %v251_v46 = vld [vmem:[#allocation3 + $0x8] sm:$0xff] }
 0x253   :  { %264 = vrot.lane.b32.xlu1 %v251_v46, %s1071_s0 }
 0x254   :  { %v250_v47 = vld [vmem:[#allocation3] sm:$0xff] }
 0x255   :  { %262 = vrot.lane.b32.xlu0 %v250_v47, %s1071_s0 }
 0x257   :  { %284 = vrot.lane.b32.xlu1 %v253_v44, %s1072_s19 }
 0x259   :  { %282 = vrot.lane.b32.xlu0 %v252_v45, %s1072_s19 }
 0x25b   :  { %280 = vrot.lane.b32.xlu1 %v251_v46, %s1072_s19 }
 0x25d   :  { %278 = vrot.lane.b32.xlu0 %v250_v47, %s1072_s19 }
 0x25f   :  { %315 = vperm.xlu1 %1022, %v297_v49  }
 0x261   :  { %310 = vperm.xlu0 %1021, %v296_v50  }
 0x263   :  { %305 = vperm.xlu1 %1022, %v295_v51  }
 0x265   :  { %300 = vperm.xlu0 %1021, %v294_v52  }
 0x2c1   :  { %v269_v53 = vpop.permute.xlu1 %268 }
 0x2c2   :  { %918 = vmatprep.subr.msk.mxu1 %vm1157_vm2, %v269_v53 }
 0x2c3   :  { %919 = vmatpush3.msk.msra.mxu1 %vm1157_vm2, %v269_v53  ;;  %v267_v54 = vpop.permute.xlu0 %266 }
 0x2c4   :  { %920 = vmatprep.subr.msk.mxu1 %vm1157_vm2, %v267_v54 }
 0x2c5   :  { %v265_v55 = vpop.permute.xlu1 %264  ;;  %921 = vmatpush3.msk.msra.mxu1 %vm1157_vm2, %v267_v54 }
 0x2c6   :  { %922 = vmatprep.subr.msk.mxu1 %vm1157_vm2, %v265_v55 }
 0x2c7   :  { %923 = vmatpush3.msk.msra.mxu1 %vm1157_vm2, %v265_v55  ;;  %v263_v56 = vpop.permute.xlu0 %262 }
 0x2c8   :  { %924 = vmatprep.subr.msk.mxu1 %vm1157_vm2, %v263_v56 }
 0x2c9   :  { %v285_v57 = vpop.permute.xlu1 %284  ;;  %925 = vmatpush3.msk.msra.mxu1 %vm1157_vm2, %v263_v56 }
 0x2ca   :  { %926 = vmatprep.subr.mxu1 %v285_v57 }
 0x2cb   :  { %927 = vmatpush3.msra.mxu1 %v285_v57  ;;  %v283_v58 = vpop.permute.xlu0 %282 }
 0x2cc   :  { %928 = vmatprep.subr.mxu1 %v283_v58 }
 0x2cd   :  { %v281_v59 = vpop.permute.xlu1 %280  ;;  %929 = vmatpush3.msra.mxu1 %v283_v58  ;;  %v1074_v58 = vmov 0.0  }
 0x2ce   :  { %930 = vmatprep.subr.mxu1 %v281_v59 }
 0x2cf   :  { %931 = vmatpush3.msra.mxu1 %v281_v59  ;;  %v279_v60 = vpop.permute.xlu0 %278 }
 0x2d0   :  { %932 = vmatprep.subr.mxu1 %v279_v60 }
 0x2d1   :  { %933 = vmatpush3.msra.mxu1 %v279_v60 }
 0x2d2   :  { %934 = vmatprep.subr.msk.mxu1 %vm1169_vm3, %v253_v44 }
 0x2d3   :  { %935 = vmatpush3.msk.msra.mxu1 %vm1169_vm3, %v253_v44 }
 0x2d4   :  { %936 = vmatprep.subr.msk.mxu1 %vm1169_vm3, %v252_v45 }
 0x2d5   :  { %937 = vmatpush3.msk.msra.mxu1 %vm1169_vm3, %v252_v45 }
 0x2d6   :  { %938 = vmatprep.subr.msk.mxu1 %vm1169_vm3, %v251_v46 }
 0x2d7   :  { %939 = vmatpush3.msk.msra.mxu1 %vm1169_vm3, %v251_v46 }
 0x2d8   :  { %940 = vmatprep.subr.msk.mxu1 %vm1169_vm3, %v250_v47 }
 0x2d9   :  { %941 = vmatpush3.msk.msra.mxu1 %vm1169_vm3, %v250_v47 }
 0x2da   :  { %943 = vmatmul.mubr.msk.f32.vlgmr.msra.gmra.mxu1 %vm318_vm4, %v291_v61  ;;  %v316_v0 = vpop.permute.xlu1 %315  ;;  %978 = vmatprep.subr.mxu1 %v1074_v58 }
 0x2db   :  { %945 = vmatprep.mubr.msk.f32.mxu1 %vm318_vm4, %v292_v62 }
 0x2dc   :  { %v311_v2 = vpop.permute.xlu0 %310 }
 0x2de   :  { %946 = vmatmul.mubr.msk.f32.gmra.mxu1 %vm318_vm4, %v293_v63  ;;  %v306_v6 = vpop.permute.xlu1 %305 }
 0x2df   :  { %1002 = vmatprep.mubr.msk.f32.mxu1 %vm1075_vm5, %v1074_v58 }
 0x2e0   :  { %v301_v11 = vpop.permute.xlu0 %300 }
 0x39a   :  { %v944_v1 = vpop.f32.mrf.mxu1 }
 0x39b   :  { %v403_v8 = vadd.f32 %v944_v1, %v306_v6 }
 0x39c   :  { %v397_v3 = vpop.f32.mrf.mxu1 }
 0x39d   :  { %v398_v12 = vadd.f32 %v397_v3, %v301_v11  ;;  %v417_v14 = vmax.f32 %v403_v8, 0.0  ;;  %v672_v3 = vld [vmem:[%s1433_s8] sm:$0xff] }
 0x39e   :  { %v947_v4 = vpop.f32.mrf.mxu1 }
 0x39f   :  { %v413_v5 = vadd.f32 %v947_v4, %v316_v0  ;;  %v416_v16 = vmax.f32 %v398_v12, 0.0  ;;  %v673_v4 = vld [vmem:[%s1433_s8 + $0x8] sm:$0xff] }
 0x3a0   :  { %v407_v7 = vpop.f32.mrf.mxu1 }
 0x3a1   :  { %v419_v9 = vmax.f32 %v413_v5, 0.0  ;;  %v408_v10 = vadd.f32 %v407_v7, %v311_v2  ;;  %v674_v5 = vld [vmem:[%s1433_s8 + $0x10] sm:$0xff] }
 0x3a3   :  { %v418_v13 = vmax.f32 %v408_v10, 0.0  ;;  %430 = vrot.lane.b32.xlu1 %v419_v9, %s1070_s16 }
 0x3a5   :  { %428 = vrot.lane.b32.xlu0 %v418_v13, %s1070_s16 }
 0x3a7   :  { %426 = vrot.lane.b32.xlu1 %v417_v14, %s1070_s16  ;;  %v670_v14 = vld [vmem:[%s1432_s7 + $0x8] sm:$0xff] }
 0x3a9   :  { %424 = vrot.lane.b32.xlu0 %v416_v16, %s1070_s16  ;;  %v671_v16 = vld [vmem:[%s1432_s7 + $0x10] sm:$0xff]  ;;  %s1043_s7 = scalar_lea.vmem %s789_s30, 384 }
 0x3aa   :  { %p1044_p5 = scmp.ne.s32.totalorder %s789_s30, %s1043_s7  ;;  %p1049_p7 = scmp.lt.s32.totalorder %s1043_s7, %s1043_s7 }
 0x3ac   :  { %p1050_p8 = por %p1049_p7, %p1048_p6 }
 0x3ae   :  { %p1051_p9 = pnand %p1050_p8, %p1044_p5 }
 0x415   :  { %v431_v17 = vpop.permute.xlu1 %430 }
 0x416   :  { %439 = vst.msk [vmem:[#allocation3 + $0x18] sm:$0xff] %vm73_vm0, %v431_v17 }
 0x417   :  { %v429_v18 = vpop.permute.xlu0 %428 }
 0x418   :  { %438 = vst.msk [vmem:[#allocation3 + $0x10] sm:$0xff] %vm73_vm0, %v429_v18 }
 0x419   :  { %v427_v19 = vpop.permute.xlu1 %426 }
 0x41a   :  { %437 = vst.msk [vmem:[#allocation3 + $0x8] sm:$0xff] %vm73_vm0, %v427_v19 }
 0x41b   :  { %v425_v21 = vpop.permute.xlu0 %424 }
 0x41c   :  { %436 = vst.msk [vmem:[#allocation3] sm:$0xff] %vm73_vm0, %v425_v21 }
 0x41d   :  { %v443_v22 = vld [vmem:[#allocation3 + $0x18] sm:$0xff] }
 0x41e   :  { %458 = vrot.lane.b32.xlu1 %v443_v22, %s1071_s0 }
 0x41f   :  { %v442_v23 = vld [vmem:[#allocation3 + $0x10] sm:$0xff] }
 0x420   :  { %456 = vrot.lane.b32.xlu0 %v442_v23, %s1071_s0 }
 0x421   :  { %v441_v24 = vld [vmem:[#allocation3 + $0x8] sm:$0xff] }
 0x422   :  { %454 = vrot.lane.b32.xlu1 %v441_v24, %s1071_s0 }
 0x423   :  { %v440_v25 = vld [vmem:[#allocation3] sm:$0xff] }
 0x424   :  { %452 = vrot.lane.b32.xlu0 %v440_v25, %s1071_s0 }
 0x426   :  { %474 = vrot.lane.b32.xlu1 %v443_v22, %s1072_s19 }
 0x428   :  { %472 = vrot.lane.b32.xlu0 %v442_v23, %s1072_s19 }
 0x42a   :  { %470 = vrot.lane.b32.xlu1 %v441_v24, %s1072_s19 }
 0x42c   :  { %468 = vrot.lane.b32.xlu0 %v440_v25, %s1072_s19 }
 0x42e   :  { %505 = vperm.xlu1 %1022, %v487_v27  }
 0x430   :  { %500 = vperm.xlu0 %1021, %v486_v28  }
 0x432   :  { %495 = vperm.xlu1 %1022, %v485_v29  }
 0x434   :  { %490 = vperm.xlu0 %1021, %v484_v30  }
 0x490   :  { %v459_v31 = vpop.permute.xlu1 %458 }
 0x491   :  { %948 = vmatprep.subr.msk.mxu0 %vm1157_vm2, %v459_v31 }
 0x492   :  { %949 = vmatpush3.msk.msra.mxu0 %vm1157_vm2, %v459_v31  ;;  %v457_v32 = vpop.permute.xlu0 %456 }
 0x493   :  { %950 = vmatprep.subr.msk.mxu0 %vm1157_vm2, %v457_v32 }
 0x494   :  { %v455_v33 = vpop.permute.xlu1 %454  ;;  %951 = vmatpush3.msk.msra.mxu0 %vm1157_vm2, %v457_v32 }
 0x495   :  { %952 = vmatprep.subr.msk.mxu0 %vm1157_vm2, %v455_v33 }
 0x496   :  { %953 = vmatpush3.msk.msra.mxu0 %vm1157_vm2, %v455_v33  ;;  %v453_v34 = vpop.permute.xlu0 %452 }
 0x497   :  { %954 = vmatprep.subr.msk.mxu0 %vm1157_vm2, %v453_v34 }
 0x498   :  { %v475_v35 = vpop.permute.xlu1 %474  ;;  %955 = vmatpush3.msk.msra.mxu0 %vm1157_vm2, %v453_v34 }
 0x499   :  { %956 = vmatprep.subr.mxu0 %v475_v35 }
 0x49a   :  { %957 = vmatpush3.msra.mxu0 %v475_v35  ;;  %v473_v36 = vpop.permute.xlu0 %472 }
 0x49b   :  { %958 = vmatprep.subr.mxu0 %v473_v36 }
 0x49c   :  { %v471_v37 = vpop.permute.xlu1 %470  ;;  %959 = vmatpush3.msra.mxu0 %v473_v36 }
 0x49d   :  { %960 = vmatprep.subr.mxu0 %v471_v37 }
 0x49e   :  { %961 = vmatpush3.msra.mxu0 %v471_v37  ;;  %v469_v38 = vpop.permute.xlu0 %468 }
 0x49f   :  { %962 = vmatprep.subr.mxu0 %v469_v38 }
 0x4a0   :  { %963 = vmatpush3.msra.mxu0 %v469_v38 }
 0x4a1   :  { %964 = vmatprep.subr.msk.mxu0 %vm1169_vm3, %v443_v22 }
 0x4a2   :  { %965 = vmatpush3.msk.msra.mxu0 %vm1169_vm3, %v443_v22 }
 0x4a3   :  { %966 = vmatprep.subr.msk.mxu0 %vm1169_vm3, %v442_v23 }
 0x4a4   :  { %967 = vmatpush3.msk.msra.mxu0 %vm1169_vm3, %v442_v23 }
 0x4a5   :  { %968 = vmatprep.subr.msk.mxu0 %vm1169_vm3, %v441_v24 }
 0x4a6   :  { %969 = vmatpush3.msk.msra.mxu0 %vm1169_vm3, %v441_v24 }
 0x4a7   :  { %970 = vmatprep.subr.msk.mxu0 %vm1169_vm3, %v440_v25 }
 0x4a8   :  { %971 = vmatpush3.msk.msra.mxu0 %vm1169_vm3, %v440_v25 }
 0x4a9   :  { %973 = vmatmul.mubr.msk.f32.vlgmr.msra.gmra.mxu0 %vm318_vm4, %v481_v39  ;;  %v506_v42 = vpop.permute.xlu1 %505 }
 0x4aa   :  { %975 = vmatprep.mubr.msk.f32.mxu0 %vm318_vm4, %v482_v40 }
 0x4ab   :  { %v501_v44 = vpop.permute.xlu0 %500 }
 0x4ad   :  { %976 = vmatmul.mubr.msk.f32.gmra.mxu0 %vm318_vm4, %v483_v41  ;;  %v496_v48 = vpop.permute.xlu1 %495 }
 0x4af   :  { %v491_v53 = vpop.permute.xlu0 %490 }
 0x569   :  { %v974_v43 = vpop.f32.mrf.mxu0 }
 0x56a   :  { %v592_v50 = vadd.f32 %v974_v43, %v496_v48 }
 0x56b   :  { %v586_v45 = vpop.f32.mrf.mxu0 }
 0x56c   :  { %v587_v54 = vadd.f32 %v586_v45, %v491_v53  ;;  %v606_v56 = vmax.f32 %v592_v50, 0.0 }
 0x56d   :  { %v977_v46 = vpop.f32.mrf.mxu0 }
 0x56e   :  { %v602_v47 = vadd.f32 %v977_v46, %v506_v42  ;;  %v605_v57 = vmax.f32 %v587_v54, 0.0 }
 0x56f   :  { %v596_v49 = vpop.f32.mrf.mxu0 }
 0x570   :  { %v608_v51 = vmax.f32 %v602_v47, 0.0  ;;  %v597_v52 = vadd.f32 %v596_v49, %v501_v44 }
 0x572   :  { %v607_v55 = vmax.f32 %v597_v52, 0.0  ;;  %619 = vrot.lane.b32.xlu1 %v608_v51, %s1070_s16 }
 0x574   :  { %617 = vrot.lane.b32.xlu0 %v607_v55, %s1070_s16 }
 0x576   :  { %615 = vrot.lane.b32.xlu1 %v606_v56, %s1070_s16 }
 0x578   :  { %613 = vrot.lane.b32.xlu0 %v605_v57, %s1070_s16 }
 0x5e4   :  { %v620_v59 = vpop.permute.xlu1 %619 }
 0x5e5   :  { %628 = vst.msk [vmem:[#allocation3 + $0x18] sm:$0xff] %vm73_vm0, %v620_v59 }
 0x5e6   :  { %v618_v60 = vpop.permute.xlu0 %617 }
 0x5e7   :  { %627 = vst.msk [vmem:[#allocation3 + $0x10] sm:$0xff] %vm73_vm0, %v618_v60 }
 0x5e8   :  { %v616_v61 = vpop.permute.xlu1 %615 }
 0x5e9   :  { %626 = vst.msk [vmem:[#allocation3 + $0x8] sm:$0xff] %vm73_vm0, %v616_v61 }
 0x5ea   :  { %v614_v62 = vpop.permute.xlu0 %613 }
 0x5eb   :  { %625 = vst.msk [vmem:[#allocation3] sm:$0xff] %vm73_vm0, %v614_v62 }
 0x5ec   :  { %v632_v63 = vld [vmem:[#allocation3 + $0x18] sm:$0xff] }
 0x5ed   :  { %647 = vrot.lane.b32.xlu1 %v632_v63, %s1071_s0 }
 0x5ee   :  { %v631_v0 = vld [vmem:[#allocation3 + $0x10] sm:$0xff] }
 0x5ef   :  { %645 = vrot.lane.b32.xlu0 %v631_v0, %s1071_s0 }
 0x5f0   :  { %v630_v1 = vld [vmem:[#allocation3 + $0x8] sm:$0xff] }
 0x5f1   :  { %643 = vrot.lane.b32.xlu1 %v630_v1, %s1071_s0 }
 0x5f2   :  { %v629_v2 = vld [vmem:[#allocation3] sm:$0xff] }
 0x5f3   :  { %641 = vrot.lane.b32.xlu0 %v629_v2, %s1071_s0 }
 0x5f5   :  { %663 = vrot.lane.b32.xlu1 %v632_v63, %s1072_s19 }
 0x5f7   :  { %661 = vrot.lane.b32.xlu0 %v631_v0, %s1072_s19 }
 0x5f9   :  { %659 = vrot.lane.b32.xlu1 %v630_v1, %s1072_s19 }
 0x5fb   :  { %657 = vrot.lane.b32.xlu0 %v629_v2, %s1072_s19 }
 0x5fd   :  { %677 = vperm.xlu1 %1022, %v672_v3  }
 0x5ff   :  { %682 = vperm.xlu0 %1021, %v673_v4  }
 0x601   :  { %687 = vperm.xlu1 %1022, %v674_v5  }
 0x65f   :  { %v648_v6 = vpop.permute.xlu1 %647 }
 0x660   :  { %979 = vmatpush3.msk.msra.mxu1 %vm1157_vm2, %v648_v6 }
 0x661   :  { %980 = vmatprep.subr.mxu1 %v1074_v58  ;;  %v646_v7 = vpop.permute.xlu0 %645 }
 0x662   :  { %981 = vmatpush3.msk.msra.mxu1 %vm1157_vm2, %v646_v7 }
 0x663   :  { %v644_v8 = vpop.permute.xlu1 %643  ;;  %982 = vmatprep.subr.mxu1 %v1074_v58 }
 0x664   :  { %983 = vmatpush3.msk.msra.mxu1 %vm1157_vm2, %v644_v8 }
 0x665   :  { %984 = vmatprep.subr.mxu1 %v1074_v58  ;;  %v642_v9 = vpop.permute.xlu0 %641 }
 0x666   :  { %985 = vmatpush3.msk.msra.mxu1 %vm1157_vm2, %v642_v9 }
 0x667   :  { %v664_v10 = vpop.permute.xlu1 %663  ;;  %986 = vmatprep.subr.mxu1 %v1074_v58 }
 0x668   :  { %987 = vmatpush3.msra.mxu1 %v664_v10 }
 0x669   :  { %988 = vmatprep.subr.mxu1 %v1074_v58  ;;  %v662_v11 = vpop.permute.xlu0 %661 }
 0x66a   :  { %989 = vmatpush3.msra.mxu1 %v662_v11 }
 0x66b   :  { %v660_v12 = vpop.permute.xlu1 %659  ;;  %990 = vmatprep.subr.mxu1 %v1074_v58 }
 0x66c   :  { %991 = vmatpush3.msra.mxu1 %v660_v12 }
 0x66d   :  { %992 = vmatprep.subr.mxu1 %v1074_v58  ;;  %v658_v13 = vpop.permute.xlu0 %657 }
 0x66e   :  { %993 = vmatpush3.msra.mxu1 %v658_v13 }
 0x66f   :  { %994 = vmatprep.subr.mxu1 %v1074_v58 }
 0x670   :  { %995 = vmatpush3.msk.msra.mxu1 %vm1169_vm3, %v632_v63 }
 0x671   :  { %996 = vmatprep.subr.mxu1 %v1074_v58 }
 0x672   :  { %997 = vmatpush3.msk.msra.mxu1 %vm1169_vm3, %v631_v0 }
 0x673   :  { %998 = vmatprep.subr.mxu1 %v1074_v58 }
 0x674   :  { %999 = vmatpush3.msk.msra.mxu1 %vm1169_vm3, %v630_v1 }
 0x675   :  { %1000 = vmatprep.subr.mxu1 %v1074_v58 }
 0x676   :  { %1001 = vmatpush3.msk.msra.mxu1 %vm1169_vm3, %v629_v2 }
 0x677   :  { %1003 = vmatmul.mubr.msk.f32.vlgmr.msra.gmra.mxu1 %vm318_vm4, %v669_v15 }
 0x678   :  { %1005 = vmatprep.mubr.msk.f32.mxu1 %vm1075_vm5, %v1074_v58  ;;  %v678_v20 = vpop.permute.xlu1 %677 }
 0x67a   :  { %v683_v21 = vpop.permute.xlu0 %682 }
 0x67b   :  { %1006 = vmatmul.mubr.msk.f32.gmra.mxu1 %vm318_vm4, %v670_v14 }
 0x67c   :  { %1008 = vmatprep.mubr.msk.f32.mxu1 %vm1075_vm5, %v1074_v58  ;;  %v688_v25 = vpop.permute.xlu1 %687 }
 0x67f   :  { %1009 = vmatmul.mubr.msk.f32.gmra.mxu1 %vm318_vm4, %v671_v16 }
 0x737   :  { %v765_v17 = vpop.f32.mrf.mxu1 }
 0x738   :  { %v766_v18 = vadd.f32 %v765_v17, %v678_v20 }
 0x739   :  { %v1004_v19 = vpop.f32.mrf.mxu1 }
 0x73a   :  { %780 = vst.msk [vmem:[#allocation7] sm:$0xff] %vm779_vm6, %v766_v18 }
 0x73b   :  { %v770_v22 = vpop.f32.mrf.mxu1 }
 0x73c   :  { %v771_v23 = vadd.f32 %v770_v22, %v683_v21 }
 0x73d   :  { %v1007_v24 = vpop.f32.mrf.mxu1 }
 0x73e   :  { %781 = vst.msk [vmem:[#allocation7 + $0x8] sm:$0xff] %vm779_vm6, %v771_v23 }
 0x73f   :  { %v775_v26 = vpop.f32.mrf.mxu1 }
 0x740   :  { %v776_v27 = vadd.f32 %v775_v26, %v688_v25 }
 0x741   :  { %v1010_v28 = vpop.f32.mrf.mxu1 }
 0x742   :  { %782 = vst.msk [vmem:[#allocation7 + $0x10] sm:$0xff] %vm779_vm6, %v776_v27 }
 0x743   :  { %1054 = shalt.err (!%p1051_p9)
}
 0x744   :  { %794 = dma.vmem_to_hbm [thread:$0]  %s789_s30, 384, %s1434_s9, [#allocation6], %s1068_s12, %s1068_s12, %s1069_s13  }
 0x745   :  { %1065 = dma.done.wait [#allocation6], 384  }
 0x746   :  { %1066 = vsyncadd [#allocation6], 4294966912 }
 0x747   :  { %798 = vsyncpa [#allocation5], 1 }
 0x748   :  { %799 = vsyncpa [#allocation6], 1 }

</bundles_post_ra>
